<compile_context>
chip_gen: v7x
topology: tpu7x:2x2x1
jax: 0.10.0
libtpu: 0.0.40
codegen_flags: <defaults>
</compile_context>

<pallas_src>
import math
import numpy as np
import jax
import jax.numpy as jnp
from jax.experimental import pallas as pl
from jax.experimental.pallas import tpu as pltpu

IMG = 16                 # perspective image side (image_shape=16)
ERP_W, ERP_H = 64, 32    # erp_image_shape=(64, 32) -> (W, H)
PERSP = IMG * IMG        # 256
ERP = ERP_H * ERP_W      # 2048
FOV_DEG = 90.0


def build_extraction_matrix():
    """ImageExtraction: ERP(2048) -> perspective(256). Rows: persp pixel, cols: ERP pixel."""
    A = np.zeros((PERSP, ERP), dtype=np.float32)
    t = math.tan(math.radians(FOV_DEG) / 2.0)
    for i in range(IMG):
        for j in range(IMG):
            u = (j + 0.5) / IMG * 2.0 - 1.0
            v = (i + 0.5) / IMG * 2.0 - 1.0
            x, y, z = u * t, v * t, 1.0
            lon = math.atan2(x, z)
            lat = math.atan2(y, math.hypot(x, z))
            fc = (lon / (2.0 * math.pi) + 0.5) * ERP_W - 0.5
            fr = (lat / math.pi + 0.5) * ERP_H - 0.5
            c0, r0 = math.floor(fc), math.floor(fr)
            wc, wr = fc - c0, fr - r0
            p = i * IMG + j
            for dr, dc, w in ((0, 0, (1 - wr) * (1 - wc)), (0, 1, (1 - wr) * wc),
                              (1, 0, wr * (1 - wc)), (1, 1, wr * wc)):
                rr = min(max(r0 + dr, 0), ERP_H - 1)
                cc = (c0 + dc) % ERP_W
                A[p, rr * ERP_W + cc] += w
    return A


def build_reverse_matrix():
    """ExtractImageConvertor: perspective(256) -> ERP(2048). Rows: ERP pixel, cols: persp pixel."""
    A = np.zeros((ERP, PERSP), dtype=np.float32)
    t = math.tan(math.radians(FOV_DEG) / 2.0)
    for r in range(ERP_H):
        for c in range(ERP_W):
            lon = ((c + 0.5) / ERP_W - 0.5) * 2.0 * math.pi
            lat = ((r + 0.5) / ERP_H - 0.5) * math.pi
            z = math.cos(lat) * math.cos(lon)
            x = math.cos(lat) * math.sin(lon)
            y = math.sin(lat)
            if z <= 1e-6:
                continue
            u = (x / z) / t
            v = (y / z) / t
            if abs(u) > 1.0 or abs(v) > 1.0:
                continue
            fj = (u + 1.0) / 2.0 * IMG - 0.5
            fi = (v + 1.0) / 2.0 * IMG - 0.5
            j0, i0 = math.floor(fj), math.floor(fi)
            wj, wi = fj - j0, fi - i0
            e = r * ERP_W + c
            for di, dj, w in ((0, 0, (1 - wi) * (1 - wj)), (0, 1, (1 - wi) * wj),
                              (1, 0, wi * (1 - wj)), (1, 1, wi * wj)):
                ii = min(max(i0 + di, 0), IMG - 1)
                jj = min(max(j0 + dj, 0), IMG - 1)
                A[e, ii * IMG + jj] += w
    return A


def build_fused_blur_matrix():
    """Fused fixed operator: out_flat = x_flat @ B, B = rev.T @ ext.T = (ext @ rev).T  (256x256)."""
    ext = build_extraction_matrix()   # (256, 2048)
    rev = build_reverse_matrix()      # (2048, 256)
    return np.ascontiguousarray((ext @ rev).T.astype(np.float32))   # (256, 256)


def gaussian_blur_kernel(rate_ref, x_ref, b_ref, o_ref):
    # rate_ref: (1,)  f32 in SMEM (the raw update_rate parameter)
    # x_ref:    (TM, 256) bf16 tile of flattened perspective images
    # b_ref:    (256, 256) bf16 fused blur matrix (resident across grid)
    # o_ref:    (TM, 256) f32 output tile
    out = jnp.dot(x_ref[...], b_ref[...], preferred_element_type=jnp.float32)
    # splat SMEM scalar to a (1,1) vreg, sigmoid on EUP, broadcast-multiply on VPU
    scale = jax.nn.sigmoid(jnp.full((1, 1), rate_ref[0], dtype=jnp.float32))
    o_ref[...] = out * scale


def gaussian_blur(x, update_rate, blur_matrix_bf16):
    # x: [N, C, 16, 16] float32 (NCHW);  blur_matrix_bf16: (256, 256) bf16 fused operator
    n, c, h, w = x.shape
    assert (h, w) == (IMG, IMG)
    m = n * c
    x_flat = x.reshape(m, PERSP).astype(jnp.bfloat16)

    # Row tiling: 256-row tiles for large M (fills MXU rows, amortizes per-step
    # overhead); small M is rounded up to one 16-row tile (bf16 sublane packing).
    tm = 256 if m > 256 else max(16, ((m + 15) // 16) * 16)
    grid_m = pl.cdiv(m, tm)
    m_pad = grid_m * tm
    if m_pad != m:
        x_flat = jnp.pad(x_flat, ((0, m_pad - m), (0, 0)))

    rate = update_rate.reshape(1).astype(jnp.float32)

    cost = pl.CostEstimate(
        flops=2 * m_pad * PERSP * PERSP,
        transcendentals=grid_m,
        bytes_accessed=m_pad * PERSP * 2 + PERSP * PERSP * 2 + m_pad * PERSP * 4 + 4,
    )

    out_flat = pl.pallas_call(
        gaussian_blur_kernel,
        out_shape=jax.ShapeDtypeStruct((m_pad, PERSP), jnp.float32),
        grid=(grid_m,),
        in_specs=[
            pl.BlockSpec(memory_space=pltpu.MemorySpace.SMEM),      # update_rate (1,) scalar
            pl.BlockSpec((tm, PERSP), lambda i: (i, 0)),            # x row tile
            pl.BlockSpec((PERSP, PERSP), lambda i: (0, 0)),         # fused B, stays resident
        ],
        out_specs=pl.BlockSpec((tm, PERSP), lambda i: (i, 0)),
        compiler_params=pltpu.CompilerParams(
            dimension_semantics=("parallel",),
        ),
        cost_estimate=cost,
    )(rate, x_flat, blur_matrix_bf16)

    return out_flat[:m].reshape(n, c, h, w)


if __name__ == "__main__":
    # Deterministic parameter / operator setup (module __init__ semantics).
    update_rate = jnp.zeros((1,), dtype=jnp.float32)        # nn.Parameter(torch.tensor([0.]))
    B_f32 = build_fused_blur_matrix()                        # (256, 256) fused fixed operator
    B_bf16 = jnp.asarray(B_f32, dtype=jnp.bfloat16)

    # Example input: batch=2, channels=4, spatial=16x16 (NCHW).
    key = jax.random.PRNGKey(0)
    x = jax.random.normal(key, (2, 4, IMG, IMG), dtype=jnp.float32)

    y = gaussian_blur(x, update_rate, B_bf16)
    y = jax.block_until_ready(y)
    assert y.shape == x.shape

    x_flat = x.reshape(-1, PERSP)
    scale = jax.nn.sigmoid(update_rate[0])

    # (a) Kernel-numerics check: same bf16 fused math, f32 accumulation (tight tol).
    ref_bf = scale * jnp.dot(x_flat.astype(jnp.bfloat16), B_bf16,
                             preferred_element_type=jnp.float32)
    assert jnp.allclose(y.reshape(-1, PERSP), ref_bf, atol=2e-3, rtol=2e-3)

    # (b) Module-semantics check: full-f32 two-operator reference (bf16-level tol).
    ext = build_extraction_matrix()
    rev = build_reverse_matrix()
    ref_full = float(scale) * (np.asarray(x_flat) @ rev.T @ ext.T)
    assert jnp.allclose(y.reshape(-1, PERSP), jnp.asarray(ref_full), atol=5e-2, rtol=5e-2)

    print("KERNEL_OK")
</pallas_src>

<mosaic_0001>
module attributes {stable_mosaic.version = 11 : i64} {
  func.func @gaussian_blur_kernel(%arg0: i32, %arg1: memref<1xf32, #tpu.memory_space<smem>>, %arg2: memref<16x256xbf16, #tpu.memory_space<vmem>>, %arg3: memref<256x256xbf16, #tpu.memory_space<vmem>>, %arg4: memref<16x256xf32, #tpu.memory_space<vmem>>) attributes {dimension_semantics = [#tpu.dimension_semantics<parallel>], iteration_bounds = array<i64: 1>, scalar_prefetch = 0 : i64, scratch_operands = 0 : i64, tpu.core_type = #tpu.core_type<tc>, window_params = [{transform_indices = @transform_0, window_bounds = array<i64: 1>}, {transform_indices = @transform_1, window_bounds = array<i64: 16, 256>}, {pipeline_mode = #tpu.pipeline_mode<synchronous>, transform_indices = @transform_2, window_bounds = array<i64: 256, 256>}, {transform_indices = @transform_3, window_bounds = array<i64: 16, 256>}]} {
    %c0 = arith.constant 0 : index
    %c0_0 = arith.constant 0 : index
    %0 = vector.load %arg2[%c0, %c0_0] : memref<16x256xbf16, #tpu.memory_space<vmem>>, vector<16x256xbf16>
    %c0_1 = arith.constant 0 : index
    %c0_2 = arith.constant 0 : index
    %1 = vector.load %arg3[%c0_1, %c0_2] : memref<256x256xbf16, #tpu.memory_space<vmem>>, vector<256x256xbf16>
    %cst = arith.constant dense<0.000000e+00> : vector<16x256xf32>
    %2 = tpu.matmul %0, %1, %cst {dimension_numbers = #tpu.dot_dimension_numbers<[1], [0], [0], [1], [0, 0, 1, 1], [], []>} : vector<16x256xbf16>, vector<256x256xbf16>, vector<16x256xf32> -> vector<16x256xf32>
    %c0_3 = arith.constant 0 : index
    %3 = memref.load %arg1[%c0_3] : memref<1xf32, #tpu.memory_space<smem>>
    %4 = vector.broadcast %3 : f32 to vector<1x1xf32>
    %5 = arith.negf %4 : vector<1x1xf32>
    %6 = math.exp %5 : vector<1x1xf32>
    %cst_4 = arith.constant 1.000000e+00 : f32
    %7 = vector.broadcast %cst_4 : f32 to vector<1x1xf32>
    %8 = arith.addf %7, %6 : vector<1x1xf32>
    %9 = arith.divf %7, %8 : vector<1x1xf32>
    %10 = vector.broadcast %9 : vector<1x1xf32> to vector<16x256xf32>
    %11 = arith.mulf %2, %10 : vector<16x256xf32>
    %c0_5 = arith.constant 0 : index
    %c0_6 = arith.constant 0 : index
    %12 = vector.load %arg4[%c0_5, %c0_6] : memref<16x256xf32, #tpu.memory_space<vmem>>, vector<16x256xf32>
    tpu.vector_store %arg4[%c0_5, %c0_6], %11 {strides = array<i32>} : memref<16x256xf32, #tpu.memory_space<vmem>>, vector<16x256xf32>,
    return
  }
  func.func @transform_0(%arg0: i32) -> i32 {
    %c0_i32 = arith.constant 0 : i32
    %c0_i32_0 = arith.constant 0 : i32
    return %c0_i32 : i32
  }
  func.func @transform_1(%arg0: i32) -> (i32, i32) {
    %c0_i32 = arith.constant 0 : i32
    %c0_i32_0 = arith.constant 0 : i32
    return %arg0, %c0_i32 : i32, i32
  }
  func.func @transform_2(%arg0: i32) -> (i32, i32) {
    %c0_i32 = arith.constant 0 : i32
    %c0_i32_0 = arith.constant 0 : i32
    %c0_i32_1 = arith.constant 0 : i32
    return %c0_i32, %c0_i32_0 : i32, i32
  }
  func.func @transform_3(%arg0: i32) -> (i32, i32) {
    %c0_i32 = arith.constant 0 : i32
    %c0_i32_0 = arith.constant 0 : i32
    return %arg0, %c0_i32 : i32, i32
  }
}

</mosaic_0001>

<bundles_post_ra>
// kernel: tpu_custom_call.1
= control target key start
LH: loop header
LB: loop body
LE: loop exit
PB: predicated region body
PF: predicated region fallthrough
CT: control target
= control target key end

     0   :  { %9 = vsyncpa [#allocation4], 0  ;;  %s560_s0 = inlined_call_operand.<no memory space> [shape: f32[1], index: 0, kind: input, shape index: {}]   ;;  %s561_s1 = inlined_call_operand.hbm [shape: bf16[16,256], index: 1, kind: input, shape index: {}]   ;;  %s562_s2 = inlined_call_operand.hbm [shape: bf16[256,256], index: 2, kind: input, shape index: {}]   ;;  %s563_s3 = inlined_call_operand.hbm [shape: f32[16,256], index: 3, kind: output, shape index: {}]  }
   0x1   :  { %10 = vsyncpa [#allocation7], 0 }
   0x2   :  { %11 = vsyncpa [#allocation5], 0  ;;  %s494_s12 = smov [#allocation3]   ;;  %s422_s16 = scalar_lea.hbm %s561_s1, 256 }
   0x3   :  { %s19_s13 = sshll.u32 %s494_s12, 4  ;;  %p423_p0 = scmp.ne.s32.totalorder %s561_s1, %s422_s16  ;;  %s20_s13 = int_to_ptr.vmem [resolvable:$true] %s19_s13 }
   0x4   :  { %p426_p1 = scmp.lt.u32.totalorder %s422_s16, %s561_s1 }
   0x6   :  { %p428_p2 = pnand %p426_p1, %p423_p0 }
   0x8   :  { %431 = shalt.err (!%p428_p2)
}
   0x9   :  { %s432_s21 = scalar_lea.vmem %s20_s13, 256  ;;  %p437_p4 = scmp.lt.s32.totalorder %s20_s13, %s20_s13 }
   0xa   :  { %p433_p3 = scmp.ne.s32.totalorder %s20_s13, %s432_s21  ;;  %p438_p5 = scmp.lt.s32.totalorder %s432_s21, %s432_s21 }
   0xc   :  { %p439_p6 = por %p438_p5, %p437_p4 }
   0xe   :  { %p440_p7 = pnand %p439_p6, %p433_p3 }
  0x10   :  { %443 = shalt.err (!%p440_p7)
}
  0x11   :  { %s495_s22 = smov 128   ;;  %s496_s23 = smov 8  }
  0x12   :  { %25 = dma.hbm_to_vmem [thread:$0]  %s561_s1, 256, %s20_s13, [#allocation4], %s495_s22, %s495_s22, %s496_s23  }
  0x13   :  { %s497_s26 = smov [#allocation6]   ;;  %s444_s30 = scalar_lea.hbm %s562_s2, 4096 }
  0x14   :  { %s31_s27 = sshll.u32 %s497_s26, 4  ;;  %p445_p8 = scmp.ne.s32.totalorder %s562_s2, %s444_s30  ;;  %s32_s27 = int_to_ptr.vmem [resolvable:$true] %s31_s27 }
  0x15   :  { %p448_p9 = scmp.lt.u32.totalorder %s444_s30, %s562_s2 }
  0x17   :  { %p450_p10 = pnand %p448_p9, %p445_p8 }
  0x19   :  { %453 = shalt.err (!%p450_p10)
}
  0x1a   :  { %s454_s8 = scalar_lea.vmem %s32_s27, 4096  ;;  %p459_p12 = scmp.lt.s32.totalorder %s32_s27, %s32_s27 }
  0x1b   :  { %p455_p11 = scmp.ne.s32.totalorder %s32_s27, %s454_s8  ;;  %p460_p13 = scmp.lt.s32.totalorder %s454_s8, %s454_s8 }
  0x1d   :  { %p461_p0 = por %p460_p13, %p459_p12 }
  0x1f   :  { %p462_p1 = pnand %p461_p0, %p455_p11 }
  0x21   :  { %465 = shalt.err (!%p462_p1)
}
  0x22   :  { %37 = dma.hbm_to_vmem [thread:$0]  %s562_s2, 4096, %s32_s27, [#allocation7], %s495_s22, %s495_s22, %s496_s23  }
  0x23   :  { %488 = dma.done.wait [#allocation4], 256  }
  0x24   :  { %489 = vsyncadd [#allocation4], 4294967040 }
  0x25   :  { %490 = dma.done.wait [#allocation7], 4096  }
  0x26   :  { %491 = vsyncadd [#allocation7], 4294963200  ;;  %v367_v0 = vld [vmem:[#allocation6 + $0x4] ss:$8 sps:$4 sm:$0xff]   ;;  %v369_v1 = vld [vmem:[#allocation6] ss:$8 sps:$4 sm:$0xff]   ;;  %v292_v34 = vstv %s560_s0 }
  0x27   :  { %248 = vmatprep.subr.bf16.mxu0 %v367_v0  ;;  %v370_v2 = vld [vmem:[#allocation6 + $0x14] ss:$8 sps:$4 sm:$0xff]   ;;  %v372_v3 = vld [vmem:[#allocation6 + $0x10] ss:$8 sps:$4 sm:$0xff]   ;;  %v373_v4 = vld [vmem:[#allocation6 + $0x24] ss:$8 sps:$4 sm:$0xff]  }
  0x28   :  { %249 = vmatpush1.bf16.msra.mxu0 %v369_v1  ;;  %v375_v5 = vld [vmem:[#allocation6 + $0x20] ss:$8 sps:$4 sm:$0xff]   ;;  %v376_v6 = vld [vmem:[#allocation6 + $0x34] ss:$8 sps:$4 sm:$0xff]   ;;  %v378_v7 = vld [vmem:[#allocation6 + $0x30] ss:$8 sps:$4 sm:$0xff]  }
  0x29   :  { %250 = vmatprep.subr.bf16.mxu0 %v370_v2  ;;  %v379_v8 = vld [vmem:[#allocation6 + $0x44] ss:$8 sps:$4 sm:$0xff]   ;;  %v381_v9 = vld [vmem:[#allocation6 + $0x40] ss:$8 sps:$4 sm:$0xff]   ;;  %v382_v10 = vld [vmem:[#allocation6 + $0x54] ss:$8 sps:$4 sm:$0xff]  }
  0x2a   :  { %v384_v11 = vld [vmem:[#allocation6 + $0x50] ss:$8 sps:$4 sm:$0xff]   ;;  %v385_v12 = vld [vmem:[#allocation6 + $0x64] ss:$8 sps:$4 sm:$0xff]   ;;  %v417_v13 = vld [vmem:[#allocation3 + $0x4] ss:$8 sps:$4 sm:$0xff]  }
  0x2b   :  { %v387_v14 = vld [vmem:[#allocation6 + $0x60] ss:$8 sps:$4 sm:$0xff]   ;;  %v388_v15 = vld [vmem:[#allocation6 + $0x74] ss:$8 sps:$4 sm:$0xff]   ;;  %280 = vmatprep.mubr.bf16.mxu0 %v417_v13  ;;  %v390_v16 = vld [vmem:[#allocation6 + $0x70] ss:$8 sps:$4 sm:$0xff]  }
  0x2c   :  { %251 = vmatpush1.bf16.msra.mxu0 %v372_v3  ;;  %v391_v17 = vld [vmem:[#allocation6 + $0x84] ss:$8 sps:$4 sm:$0xff]   ;;  %v393_v18 = vld [vmem:[#allocation6 + $0x80] ss:$8 sps:$4 sm:$0xff]   ;;  %v394_v19 = vld [vmem:[#allocation6 + $0x94] ss:$8 sps:$4 sm:$0xff]  }
  0x2d   :  { %252 = vmatprep.subr.bf16.mxu0 %v373_v4  ;;  %v396_v20 = vld [vmem:[#allocation6 + $0x90] ss:$8 sps:$4 sm:$0xff]   ;;  %v397_v21 = vld [vmem:[#allocation6 + $0xa4] ss:$8 sps:$4 sm:$0xff]   ;;  %v399_v22 = vld [vmem:[#allocation6 + $0xa0] ss:$8 sps:$4 sm:$0xff]  }
  0x2e   :  { %v400_v23 = vld [vmem:[#allocation6 + $0xb4] ss:$8 sps:$4 sm:$0xff]   ;;  %v402_v24 = vld [vmem:[#allocation6 + $0xb0] ss:$8 sps:$4 sm:$0xff]   ;;  %v403_v25 = vld [vmem:[#allocation6 + $0xc4] ss:$8 sps:$4 sm:$0xff]  }
  0x2f   :  { %v405_v26 = vld [vmem:[#allocation6 + $0xc0] ss:$8 sps:$4 sm:$0xff]   ;;  %v406_v27 = vld [vmem:[#allocation6 + $0xd4] ss:$8 sps:$4 sm:$0xff]   ;;  %v408_v28 = vld [vmem:[#allocation6 + $0xd0] ss:$8 sps:$4 sm:$0xff]  }
  0x30   :  { %253 = vmatpush1.bf16.msra.mxu0 %v375_v5  ;;  %v409_v29 = vld [vmem:[#allocation6 + $0xe4] ss:$8 sps:$4 sm:$0xff]   ;;  %v411_v30 = vld [vmem:[#allocation6 + $0xe0] ss:$8 sps:$4 sm:$0xff]   ;;  %v412_v31 = vld [vmem:[#allocation6 + $0xf4] ss:$8 sps:$4 sm:$0xff]  }
  0x31   :  { %254 = vmatprep.subr.bf16.mxu0 %v376_v6  ;;  %v414_v32 = vld [vmem:[#allocation6 + $0xf0] ss:$8 sps:$4 sm:$0xff]   ;;  %v359_v35 = vmul.f32 -1.442695, %v292_v34  ;;  %s498_s11 = smov [#allocation8]  }
  0x32   :  { %v415_v33 = vld [vmem:[#allocation3] ss:$8 sps:$4 sm:$0xff]   ;;  %s312_s12 = sshll.u32 %s498_s11, 4  ;;  %s313_s12 = int_to_ptr.vmem [resolvable:$true] %s312_s12 }
  0x33   :  { %418 = vpow2.f32 %v359_v35  ;;  %s466_s0 = scalar_lea.vmem %s313_s12, 512  ;;  %p471_p3 = scmp.lt.s32.totalorder %s313_s12, %s313_s12 }
  0x34   :  { %255 = vmatpush1.bf16.msra.mxu0 %v378_v7  ;;  %p467_p2 = scmp.ne.s32.totalorder %s313_s12, %s466_s0  ;;  %p472_p4 = scmp.lt.s32.totalorder %s466_s0, %s466_s0 }
  0x35   :  { %256 = vmatprep.subr.bf16.mxu0 %v379_v8 }
  0x36   :  { %p473_p5 = por %p472_p4, %p471_p3 }
  0x38   :  { %257 = vmatpush1.bf16.msra.mxu0 %v381_v9  ;;  %p474_p6 = pnand %p473_p5, %p467_p2 }
  0x39   :  { %258 = vmatprep.subr.bf16.mxu0 %v382_v10 }
  0x3c   :  { %259 = vmatpush1.bf16.msra.mxu0 %v384_v11 }
  0x3d   :  { %260 = vmatprep.subr.bf16.mxu0 %v385_v12  ;;  %v419_v36 = vpop.eup %418 }
  0x3e   :  { %v296_v37 = vadd.f32 1.0, %v419_v36 }
  0x40   :  { %261 = vmatpush1.bf16.msra.mxu0 %v387_v14  ;;  %420 = vrcp.f32 %v296_v37 }
  0x41   :  { %262 = vmatprep.subr.bf16.mxu0 %v388_v15 }
  0x44   :  { %263 = vmatpush1.bf16.msra.mxu0 %v390_v16 }
  0x45   :  { %264 = vmatprep.subr.bf16.mxu0 %v391_v17 }
  0x48   :  { %265 = vmatpush1.bf16.msra.mxu0 %v393_v18 }
  0x49   :  { %266 = vmatprep.subr.bf16.mxu0 %v394_v19 }
  0x4a   :  { %v421_v38 = vpop.eup %420 }
  0x4c   :  { %267 = vmatpush1.bf16.msra.mxu0 %v396_v20 }
  0x4d   :  { %268 = vmatprep.subr.bf16.mxu0 %v397_v21 }
  0x50   :  { %269 = vmatpush1.bf16.msra.mxu0 %v399_v22 }
  0x51   :  { %270 = vmatprep.subr.bf16.mxu0 %v400_v23 }
  0x54   :  { %271 = vmatpush1.bf16.msra.mxu0 %v402_v24 }
  0x55   :  { %272 = vmatprep.subr.bf16.mxu0 %v403_v25 }
  0x58   :  { %273 = vmatpush1.bf16.msra.mxu0 %v405_v26 }
  0x59   :  { %274 = vmatprep.subr.bf16.mxu0 %v406_v27 }
  0x5c   :  { %275 = vmatpush1.bf16.msra.mxu0 %v408_v28 }
  0x5d   :  { %276 = vmatprep.subr.bf16.mxu0 %v409_v29 }
  0x60   :  { %277 = vmatpush1.bf16.msra.mxu0 %v411_v30 }
  0x61   :  { %278 = vmatprep.subr.bf16.mxu0 %v412_v31 }
  0x64   :  { %279 = vmatpush1.bf16.msra.mxu0 %v414_v32 }
  0x67   :  { %281 = vmatmul.mubr.bf16.vlgmr.msra.gmra.mrb[0].mxu0 %v415_v33 }
 0x13a   :  { %v282_v39 = vpop.f32.mrb[0].mxu0 }
 0x13b   :  { %v299_v40 = vmul.f32 %v421_v38, %v282_v39  ;;  %v284_v41 = vpop.f32.mrb[1].mxu0 }
 0x13c   :  { %v300_v42 = vmul.f32 %v421_v38, %v284_v41  ;;  %v286_v43 = vpop.f32.mrb[2].mxu0 }
 0x13d   :  { %303 = vst [vmem:[#allocation8] sm:$0xff] %v299_v40  ;;  %v301_v44 = vmul.f32 %v421_v38, %v286_v43  ;;  %v288_v45 = vpop.f32.mrb[3].mxu0 }
 0x13e   :  { %304 = vst [vmem:[#allocation8 + $0x8] sm:$0xff] %v300_v42  ;;  %v302_v46 = vmul.f32 %v421_v38, %v288_v45 }
 0x13f   :  { %305 = vst [vmem:[#allocation8 + $0x10] sm:$0xff] %v301_v44 }
 0x140   :  { %306 = vst [vmem:[#allocation8 + $0x18] sm:$0xff] %v302_v46 }
 0x141   :  { %477 = shalt.err (!%p474_p6)
}
 0x142   :  { %s478_s15 = scalar_lea.hbm %s563_s3, 512 }
 0x143   :  { %p479_p7 = scmp.ne.s32.totalorder %s563_s3, %s478_s15  ;;  %p482_p8 = scmp.lt.u32.totalorder %s478_s15, %s563_s3 }
 0x145   :  { %p484_p9 = pnand %p482_p8, %p479_p7 }
 0x147   :  { %487 = shalt.err (!%p484_p9)
}
 0x148   :  { %s499_s20 = smov 256   ;;  %s500_s21 = smov 16  }
 0x149   :  { %318 = dma.vmem_to_hbm [thread:$0]  %s313_s12, 512, %s563_s3, [#allocation5], %s499_s20, %s499_s20, %s500_s21  }
 0x14a   :  { %492 = dma.done.wait [#allocation5], 512  }
 0x14b   :  { %493 = vsyncadd [#allocation5], 4294966784 }
 0x14c   :  { %322 = vsyncpa [#allocation4], 1 }
 0x14d   :  { %323 = vsyncpa [#allocation7], 1 }
 0x14e   :  { %324 = vsyncpa [#allocation5], 1 }

</bundles_post_ra>
